<compile_context>
chip_gen: v5e
topology: v5e:2x2
jax: 0.10.0
libtpu: 0.0.40
codegen_flags: <defaults>
</compile_context>

<pallas_src>
import functools

import jax
import jax.numpy as jnp
from jax.experimental import pallas as pl
from jax.experimental.pallas import tpu as pltpu


def _se_block_kernel(x_ref, w1_ref, b1_ref, w2_ref, b2_ref, out_ref, acc_ref,
                     *, hw_total, hw_tile, slab_w, num_slabs, inv_hw):
    h = pl.program_id(1)
    last = pl.num_programs(1) - 1

    @pl.when(h == 0)
    def _init():
        acc_ref[...] = jnp.zeros_like(acc_ref)

    x = x_ref[...].astype(jnp.float32)                # (n_tile, C, hw_tile)

    def _slab_fold(xv):
        # Fold the hw_tile lanes into a slab_w-wide accumulator with plain
        # elementwise adds (tree) -> ~1 VALU add per loaded vreg; the
        # cross-lane XLU reduce is deferred to the epilogue.
        parts = [xv[..., k * slab_w:(k + 1) * slab_w] for k in range(num_slabs)]
        while len(parts) > 1:
            nxt = []
            for i in range(0, len(parts) - 1, 2):
                nxt.append(parts[i] + parts[i + 1])
            if len(parts) % 2:
                nxt.append(parts[-1])
            parts = nxt
        return parts[0]

    if hw_total % hw_tile != 0:
        # Only the last spatial step pays the partial-tile mask.
        @pl.when(h != last)
        def _full_step():
            acc_ref[...] += _slab_fold(x)

        @pl.when(h == last)
        def _tail_step():
            pos = jax.lax.broadcasted_iota(jnp.int32, x.shape, 2) + h * hw_tile
            acc_ref[...] += _slab_fold(jnp.where(pos < hw_total, x, 0.0))
    else:
        acc_ref[...] += _slab_fold(x)

    # --- excitation epilogue: only on the last spatial step ---
    @pl.when(h == last)
    def _epilogue():
        pooled = jnp.sum(acc_ref[...], axis=-1) * inv_hw          # (n_tile, C)
        hid = jnp.dot(pooled, w1_ref[...],
                      preferred_element_type=jnp.float32) + b1_ref[...]
        hid = jnp.maximum(hid, 0.0)                               # ReLU
        o = jnp.dot(hid, w2_ref[...],
                    preferred_element_type=jnp.float32) + b2_ref[...]
        gate = jax.nn.sigmoid(o)                                  # (n_tile, C)
        out_ref[...] = gate[:, None, :].astype(out_ref.dtype)     # (n_tile,1,C)


def _vmem_capacity_bytes():
    """Physical VMEM of the local TPU generation (fallback = smallest, v7x)."""
    default = 64 * 1024 * 1024
    try:
        info = pltpu.get_tpu_info()
    except Exception:
        return default
    for attr in ("vmem_capacity_bytes", "vmem_bytes", "vmem_size_bytes"):
        val = getattr(info, attr, None)
        if val:
            return int(val)
    return default


def se_block(x_nchw, w1, b1, w2, b2, *, hw_tile=None, n_tile=None):
    """SE_Block.forward.

    x_nchw: (N, C, H, W) in its native dtype (f32 or bf16).
    w1: (Cr, C) [Conv2d(C, Cr, 1) weight, 1x1 dims squeezed], b1: (Cr,)
    w2: (C, Cr), b2: (C,)
    Returns the sigmoid gate of shape (N, C, 1, 1) in x's dtype.
    """
    N, C, H, W = x_nchw.shape
    Cr = w1.shape[0]
    HW = H * W

    # Keep x in its native dtype -- no wrapper-side upcast / extra HBM pass.
    x_flat = x_nchw.reshape(N, C, HW)
    itemsize = jnp.dtype(x_flat.dtype).itemsize

    # Tiny excitation params in f32, pre-transposed for plain row-major matmuls.
    w1_t = jnp.asarray(w1, jnp.float32).reshape(Cr, C).T      # (C, Cr)
    w2_t = jnp.asarray(w2, jnp.float32).reshape(C, Cr).T      # (Cr, C)
    b1_2d = jnp.asarray(b1, jnp.float32).reshape(1, Cr)
    b2_2d = jnp.asarray(b2, jnp.float32).reshape(1, C)

    # --- generation-aware VMEM / tile sizing --------------------------------
    vmem_cap = _vmem_capacity_bytes()             # 128 MiB v5e/v6e, 64 MiB v7x
    vmem_limit = min(int(vmem_cap * 3 // 4), 100 * 1024 * 1024)
    # Per-x-buffer streaming budget (pipeline double-buffers it, and the acc
    # scratch is at most one more buffer) -> ~16 MiB v5e/v6e, ~9.6 MiB v7x.
    budget = min(16 * 1024 * 1024, vmem_limit // 5)

    max_slabs = 128                               # bounds the unrolled fold; 16K-lane bursts
    if hw_tile is None:
        hw_tile = budget // max(1, C * itemsize)  # longest burst with n_tile=1
        hw_tile = min(hw_tile, max_slabs * 128)
    hw_tile = int(hw_tile)
    # Lane alignment / clamping -- applies to caller-supplied values too.
    if hw_tile >= HW:
        hw_tile = HW
    else:
        hw_tile = max(128, (hw_tile // 128) * 128)
        if hw_tile >= HW:
            hw_tile = HW

    if n_tile is None:
        n_tile = budget // max(1, C * hw_tile * itemsize)
    n_tile = max(1, min(int(n_tile), N))
    # Megacore (v7x): keep >= 2 blocks on the "parallel" batch axis when possible.
    if N >= 2 and pl.cdiv(N, n_tile) < 2:
        n_tile = pl.cdiv(N, 2)
    # TODO(synk): for N == 1 on v7x the whole stream runs on one TensorCore;
    # splitting HW into two parallel partial sums would need a second pass.

    if hw_tile % 128 == 0 and hw_tile >= 128:
        num_slabs, slab_w = hw_tile // 128, 128
    else:
        num_slabs, slab_w = 1, hw_tile            # only when hw_tile == HW < 128-aligned

    grid = (pl.cdiv(N, n_tile), pl.cdiv(HW, hw_tile))

    kernel = functools.partial(
        _se_block_kernel, hw_total=HW, hw_tile=hw_tile,
        slab_w=slab_w, num_slabs=num_slabs, inv_hw=1.0 / float(HW))

    cost = pl.CostEstimate(
        flops=int(N * C * HW + 4 * N * C * Cr),
        transcendentals=int(N * (C + Cr)),
        bytes_accessed=int(N * C * HW * itemsize + N * C * itemsize
                           + 4 * (w1_t.size + w2_t.size + b1_2d.size + b2_2d.size)),
    )

    out = pl.pallas_call(
        kernel,
        out_shape=jax.ShapeDtypeStruct((N, 1, C), x_nchw.dtype),
        grid_spec=pltpu.PrefetchScalarGridSpec(
            num_scalar_prefetch=0,
            grid=grid,
            in_specs=[
                # x: streamed, (n, hw) tiled, reduction (hw) axis last.
                pl.BlockSpec((n_tile, C, hw_tile), lambda n, h: (n, 0, h)),
                # Weights / biases: constant index maps -> fetched once, resident.
                pl.BlockSpec((C, Cr), lambda n, h: (0, 0)),
                pl.BlockSpec((1, Cr), lambda n, h: (0, 0)),
                pl.BlockSpec((Cr, C), lambda n, h: (0, 0)),
                pl.BlockSpec((1, C), lambda n, h: (0, 0)),
            ],
            # (n_tile, 1, C) keeps the last two block dims full-extent, so any
            # n_tile (incl. the v7x 2-block split) is layout-legal and the
            # output stays lane-dense along C.
            out_specs=pl.BlockSpec((n_tile, 1, C), lambda n, h: (n, 0, 0)),
            scratch_shapes=[pltpu.VMEM((n_tile, C, slab_w), jnp.float32)],
        ),
        compiler_params=pltpu.CompilerParams(
            dimension_semantics=("parallel", "arbitrary"),
            vmem_limit_bytes=int(vmem_limit),
        ),
        cost_estimate=cost,
    )(x_flat, w1_t, b1_2d, w2_t, b2_2d)

    return jnp.transpose(out, (0, 2, 1)).reshape(N, C, 1, 1)


def _reference(x_nchw, w1, b1, w2, b2):
    Cr = w1.shape[0]
    C = w2.shape[0]
    pooled = jnp.mean(x_nchw.astype(jnp.float32), axis=(2, 3))          # (N, C)
    h = jnp.maximum(pooled @ jnp.asarray(w1, jnp.float32).reshape(Cr, C).T + b1, 0.0)
    o = jax.nn.sigmoid(h @ jnp.asarray(w2, jnp.float32).reshape(C, Cr).T + b2)
    return o.reshape(*o.shape, 1, 1).astype(x_nchw.dtype)


if __name__ == "__main__":
    key = jax.random.PRNGKey(0)
    kx, kw1, kb1, kw2, kb2, kx2 = jax.random.split(key, 6)

    # in_channel must be >= 16 so that in_channel // 16 >= 1
    N, C, H, W = 2, 32, 16, 16
    Cr = C // 16

    x = jax.random.normal(kx, (N, C, H, W), dtype=jnp.float32)
    w1 = jax.random.normal(kw1, (Cr, C), dtype=jnp.float32) * 0.1
    b1 = jax.random.normal(kb1, (Cr,), dtype=jnp.float32) * 0.1
    w2 = jax.random.normal(kw2, (C, Cr), dtype=jnp.float32) * 0.1
    b2 = jax.random.normal(kb2, (C,), dtype=jnp.float32) * 0.1

    # Run 1: forced small hw_tile -> multi-step streaming accumulation path
    # (2 spatial grid steps), no partial tile.
    out = jax.block_until_ready(se_block(x, w1, b1, w2, b2, hw_tile=128))
    ref = _reference(x, w1, b1, w2, b2)
    assert out.shape == (N, C, 1, 1), out.shape
    assert jnp.allclose(out, ref, atol=1e-5, rtol=1e-5), "mismatch vs reference (run 1)"

    # Run 2: spatial size not a multiple of the tile -> exercises the masked
    # partial last tile (mask only paid on the last spatial step).
    H2, W2 = 20, 20
    x2 = jax.random.normal(kx2, (N, C, H2, W2), dtype=jnp.float32)
    out2 = jax.block_until_ready(se_block(x2, w1, b1, w2, b2, hw_tile=128))
    ref2 = _reference(x2, w1, b1, w2, b2)
    assert out2.shape == (N, C, 1, 1), out2.shape
    assert jnp.allclose(out2, ref2, atol=1e-5, rtol=1e-5), "mismatch vs reference (run 2)"

    # Run 3: fully auto-derived (generation-aware) tiling -> single-step path.
    out3 = jax.block_until_ready(se_block(x, w1, b1, w2, b2))
    assert out3.shape == (N, C, 1, 1), out3.shape
    assert jnp.allclose(out3, ref, atol=1e-5, rtol=1e-5), "mismatch vs reference (run 3)"

    print("KERNEL_OK")
</pallas_src>

<mosaic_0001>
module attributes {stable_mosaic.version = 11 : i64} {
  func.func @_se_block_kernel(%arg0: i32, %arg1: i32, %arg2: memref<1x32x128xf32, #tpu.memory_space<vmem>>, %arg3: memref<32x2xf32, #tpu.memory_space<vmem>>, %arg4: memref<1x2xf32, #tpu.memory_space<vmem>>, %arg5: memref<2x32xf32, #tpu.memory_space<vmem>>, %arg6: memref<1x32xf32, #tpu.memory_space<vmem>>, %arg7: memref<1x1x32xf32, #tpu.memory_space<vmem>>, %arg8: memref<1x32x128xf32, #tpu.memory_space<vmem>>) attributes {dimension_semantics = [#tpu.dimension_semantics<parallel>, #tpu.dimension_semantics<arbitrary>], iteration_bounds = array<i64: 2, 2>, scalar_prefetch = 0 : i64, scratch_operands = 1 : i64, tpu.core_type = #tpu.core_type<tc>, window_params = [{transform_indices = @transform_0, window_bounds = array<i64: 1, 32, 128>}, {pipeline_mode = #tpu.pipeline_mode<synchronous>, transform_indices = @transform_1, window_bounds = array<i64: 32, 2>}, {pipeline_mode = #tpu.pipeline_mode<synchronous>, transform_indices = @transform_2, window_bounds = array<i64: 1, 2>}, {pipeline_mode = #tpu.pipeline_mode<synchronous>, transform_indices = @transform_3, window_bounds = array<i64: 2, 32>}, {pipeline_mode = #tpu.pipeline_mode<synchronous>, transform_indices = @transform_4, window_bounds = array<i64: 1, 32>}, {transform_indices = @transform_5, window_bounds = array<i64: 1, 1, 32>}]} {
    %c0_i32 = arith.constant 0 : i32
    %0 = arith.cmpi eq, %arg1, %c0_i32 : i32
    %1 = arith.extui %0 : i1 to i32
    %c0_i32_0 = arith.constant 0 : i32
    %2 = arith.cmpi ne, %1, %c0_i32_0 : i32
    scf.if %2 {
      %cst = arith.constant 0.000000e+00 : f32
      %10 = vector.broadcast %cst : f32 to vector<1x32x128xf32>
      %c0_10 = arith.constant 0 : index
      %c0_11 = arith.constant 0 : index
      %c0_12 = arith.constant 0 : index
      %11 = vector.load %arg8[%c0_10, %c0_11, %c0_12] : memref<1x32x128xf32, #tpu.memory_space<vmem>>, vector<1x32x128xf32>
      tpu.vector_store %arg8[%c0_10, %c0_11, %c0_12], %10 {strides = array<i32>} : memref<1x32x128xf32, #tpu.memory_space<vmem>>, vector<1x32x128xf32>,
    } else {
    }
    %c0 = arith.constant 0 : index
    %c0_1 = arith.constant 0 : index
    %c0_2 = arith.constant 0 : index
    %3 = vector.load %arg2[%c0, %c0_1, %c0_2] : memref<1x32x128xf32, #tpu.memory_space<vmem>>, vector<1x32x128xf32>
    %c0_3 = arith.constant 0 : index
    %c0_4 = arith.constant 0 : index
    %c0_5 = arith.constant 0 : index
    %4 = vector.load %arg8[%c0_3, %c0_4, %c0_5] : memref<1x32x128xf32, #tpu.memory_space<vmem>>, vector<1x32x128xf32>
    %5 = arith.addf %4, %3 : vector<1x32x128xf32>
    %c0_6 = arith.constant 0 : index
    %c0_7 = arith.constant 0 : index
    %c0_8 = arith.constant 0 : index
    %6 = vector.load %arg8[%c0_6, %c0_7, %c0_8] : memref<1x32x128xf32, #tpu.memory_space<vmem>>, vector<1x32x128xf32>
    tpu.vector_store %arg8[%c0_6, %c0_7, %c0_8], %5 {strides = array<i32>} : memref<1x32x128xf32, #tpu.memory_space<vmem>>, vector<1x32x128xf32>,
    %c1_i32 = arith.constant 1 : i32
    %7 = arith.cmpi eq, %arg1, %c1_i32 : i32
    %8 = arith.extui %7 : i1 to i32
    %c0_i32_9 = arith.constant 0 : i32
    %9 = arith.cmpi ne, %8, %c0_i32_9 : i32
    scf.if %9 {
      %c0_10 = arith.constant 0 : index
      %c0_11 = arith.constant 0 : index
      %c0_12 = arith.constant 0 : index
      %10 = vector.load %arg8[%c0_10, %c0_11, %c0_12] : memref<1x32x128xf32, #tpu.memory_space<vmem>>, vector<1x32x128xf32>
      %cst = arith.constant dense<0.000000e+00> : vector<1x32xf32>
      %11 = vector.multi_reduction <add>, %10, %cst [2] : vector<1x32x128xf32> to vector<1x32xf32>
      %cst_13 = arith.constant 3.906250e-03 : f32
      %12 = vector.broadcast %cst_13 : f32 to vector<1x32xf32>
      %13 = arith.mulf %11, %12 : vector<1x32xf32>
      %c0_14 = arith.constant 0 : index
      %c0_15 = arith.constant 0 : index
      %14 = vector.load %arg3[%c0_14, %c0_15] : memref<32x2xf32, #tpu.memory_space<vmem>>, vector<32x2xf32>
      %cst_16 = arith.constant dense<0.000000e+00> : vector<1x2xf32>
      %15 = tpu.matmul %13, %14, %cst_16 {dimension_numbers = #tpu.dot_dimension_numbers<[1], [0], [0], [1], [0, 0, 1, 1], [], []>} : vector<1x32xf32>, vector<32x2xf32>, vector<1x2xf32> -> vector<1x2xf32>
      %c0_17 = arith.constant 0 : index
      %c0_18 = arith.constant 0 : index
      %16 = vector.load %arg4[%c0_17, %c0_18] : memref<1x2xf32, #tpu.memory_space<vmem>>, vector<1x2xf32>
      %17 = arith.addf %15, %16 : vector<1x2xf32>
      %cst_19 = arith.constant 0.000000e+00 : f32
      %18 = vector.broadcast %cst_19 : f32 to vector<1x2xf32>
      %19 = arith.maximumf %17, %18 : vector<1x2xf32>
      %c0_20 = arith.constant 0 : index
      %c0_21 = arith.constant 0 : index
      %20 = vector.load %arg5[%c0_20, %c0_21] : memref<2x32xf32, #tpu.memory_space<vmem>>, vector<2x32xf32>
      %cst_22 = arith.constant dense<0.000000e+00> : vector<1x32xf32>
      %21 = tpu.matmul %19, %20, %cst_22 {dimension_numbers = #tpu.dot_dimension_numbers<[1], [0], [0], [1], [0, 0, 1, 1], [], []>} : vector<1x2xf32>, vector<2x32xf32>, vector<1x32xf32> -> vector<1x32xf32>
      %c0_23 = arith.constant 0 : index
      %c0_24 = arith.constant 0 : index
      %22 = vector.load %arg6[%c0_23, %c0_24] : memref<1x32xf32, #tpu.memory_space<vmem>>, vector<1x32xf32>
      %23 = arith.addf %21, %22 : vector<1x32xf32>
      %24 = arith.negf %23 : vector<1x32xf32>
      %25 = math.exp %24 : vector<1x32xf32>
      %cst_25 = arith.constant 1.000000e+00 : f32
      %26 = vector.broadcast %cst_25 : f32 to vector<1x32xf32>
      %27 = arith.addf %26, %25 : vector<1x32xf32>
      %28 = arith.divf %26, %27 : vector<1x32xf32>
      %29 = vector.shape_cast %28 : vector<1x32xf32> to vector<1x1x32xf32>
      %c0_26 = arith.constant 0 : index
      %c0_27 = arith.constant 0 : index
      %c0_28 = arith.constant 0 : index
      %30 = vector.load %arg7[%c0_26, %c0_27, %c0_28] : memref<1x1x32xf32, #tpu.memory_space<vmem>>, vector<1x1x32xf32>
      tpu.vector_store %arg7[%c0_26, %c0_27, %c0_28], %29 {strides = array<i32>} : memref<1x1x32xf32, #tpu.memory_space<vmem>>, vector<1x1x32xf32>,
    } else {
    }
    return
  }
  func.func @transform_0(%arg0: i32, %arg1: i32) -> (i32, i32, i32) {
    %c0_i32 = arith.constant 0 : i32
    %c0_i32_0 = arith.constant 0 : i32
    return %arg0, %c0_i32, %arg1 : i32, i32, i32
  }
  func.func @transform_1(%arg0: i32, %arg1: i32) -> (i32, i32) {
    %c0_i32 = arith.constant 0 : i32
    %c0_i32_0 = arith.constant 0 : i32
    %c0_i32_1 = arith.constant 0 : i32
    return %c0_i32, %c0_i32_0 : i32, i32
  }
  func.func @transform_2(%arg0: i32, %arg1: i32) -> (i32, i32) {
    %c0_i32 = arith.constant 0 : i32
    %c0_i32_0 = arith.constant 0 : i32
    %c0_i32_1 = arith.constant 0 : i32
    return %c0_i32, %c0_i32_0 : i32, i32
  }
  func.func @transform_3(%arg0: i32, %arg1: i32) -> (i32, i32) {
    %c0_i32 = arith.constant 0 : i32
    %c0_i32_0 = arith.constant 0 : i32
    %c0_i32_1 = arith.constant 0 : i32
    return %c0_i32, %c0_i32_0 : i32, i32
  }
  func.func @transform_4(%arg0: i32, %arg1: i32) -> (i32, i32) {
    %c0_i32 = arith.constant 0 : i32
    %c0_i32_0 = arith.constant 0 : i32
    %c0_i32_1 = arith.constant 0 : i32
    return %c0_i32, %c0_i32_0 : i32, i32
  }
  func.func @transform_5(%arg0: i32, %arg1: i32) -> (i32, i32, i32) {
    %c0_i32 = arith.constant 0 : i32
    %c0_i32_0 = arith.constant 0 : i32
    %c0_i32_1 = arith.constant 0 : i32
    return %arg0, %c0_i32, %c0_i32_0 : i32, i32, i32
  }
}

</mosaic_0001>

<bundles_post_ra>
// kernel: tpu_custom_call.1
= control target key start
LH: loop header
LB: loop body
LE: loop exit
PB: predicated region body
PF: predicated region fallthrough
CT: control target
= control target key end

     0   :  { %10 = vsyncpa [#allocation4], 0  ;;  %s1006_s0 = inlined_call_operand.hbm [shape: f32[2,32,256], index: 0, kind: input, shape index: {}]   ;;  %s1007_s1 = inlined_call_operand.vmem [shape: f32[32,2], index: 1, kind: input, shape index: {}]   ;;  %s1008_s2 = inlined_call_operand.vmem [shape: f32[1,2], index: 2, kind: input, shape index: {}]   ;;  %s1009_s3 = inlined_call_operand.vmem [shape: f32[2,32], index: 3, kind: input, shape index: {}]   ;;  %s1010_s4 = inlined_call_operand.vmem [shape: f32[1,32], index: 4, kind: input, shape index: {}]   ;;  %s1011_s5 = inlined_call_operand.hbm [shape: f32[2,1,32], index: 5, kind: output, shape index: {}]  }
   0x1   :  { %12 = vsyncpa [#allocation4 + $0x1], 0 }
   0x2   :  { %13 = vsyncpa [#allocation5], 0 }
   0x3   :  { %15 = vsyncpa [#allocation5 + $0x1], 0  ;;  %s809_s18 = smov 0   ;;  %s811_s19 = smov 0  }
   0x4   :  { %s813_s20 = smov 0   ;;  %s815_s21 = smov 0  }
   0x5   :  { %s817_s22 = smov 0   ;;  %s819_s23 = smov 0  }
   0x6   :  { %s821_s24 = smov 0   ;;  %s823_s25 = smov 0  }
   0x7   :  { %s825_s26 = smov 0   ;;  %s827_s27 = smov 0  }
   0x8   :  { %s829_s28 = smov 0  }
   0x9 LB: > { %1019 = sst [smem:[#allocation9_spill]] %s741_s20  ;;  %s494_s29 = sadd.s32 4294967295, %s773_s28   ;;  %s773_s28 = sphi %s829_s28, %s21_s28   ;;  %s769_s27 = sphi %s827_s27, %s1046_s27   ;;  %s765_s26 = sphi %s825_s26, %s1045_s26   ;;  %s761_s25 = sphi %s823_s25, %s1044_s25   ;;  %s757_s24 = sphi %s821_s24, %s1043_s24   ;;  %s753_s23 = sphi %s819_s23, %s1036_s23   ;;  %s749_s22 = sphi %s817_s22, %s1042_s22   ;;  %s745_s21 = sphi %s815_s21, %s1041_s21   ;;  %s741_s20 = sphi %s813_s20, %s1034_s20   ;;  %s737_s19 = sphi %s811_s19, %s1040_s19   ;;  %s733_s18 = sphi %s809_s18, %s1039_s18  }
   0xa   : > { %1020 = sst [smem:[#allocation10_spill]] %s753_s23  ;;  %s495_s30 = sadd.s32 4294967294, %s773_s28  }
   0xb   : > { %s30_s6 = sadd.s32 1, %s765_s26  ;;  %s33_s7 = sadd.s32 1, %s769_s27 }
   0xc   : > { %p31_p0 = scmp.ge.s32.totalorder %s30_s6, 2  ;;  %s42_s8 = sadd.s32 1, %s753_s23 }
   0xd   : > { %p49_p1 = scmp.ne.s32.totalorder %s753_s23, %s749_s22  ;;  %p50_p2 = scmp.eq.s32.totalorder %s773_s28, 0 }
   0xe   : > { %s1048_s6 = smov (%p31_p0, %s30_s6), 0  ;;  %s1050_s7 = smov (!%p31_p0, %s33_s7), %s769_s27 }
   0xf   : > { %1021 = sst [smem:[#allocation11_spill]] %s1048_s6  ;;  %s38_s9 = ssub.s32 %s765_s26, %s1048_s6 }
  0x10   : > { %p875_p3 = por %p50_p2, %p49_p1  ;;  %p35_p4 = scmp.ge.s32.totalorder %s1050_s7, 2 }
  0x11   : > { %p55_p5 = scmp.ne.s32.totalorder %s749_s22, %s745_s21  ;;  %p56_p6 = scmp.eq.s32.totalorder %s494_s29, 0 }
  0x12   : > { %s152_s11 = sadd.s32 1, %s741_s20  ;;  %s1052_s7 = smov (%p35_p4, %s1050_s7), 0 }
  0x13   : > { %1023 = sst [smem:[#allocation12_spill]] %s1052_s7  ;;  %p883_p7 = por %p56_p6, %p55_p5 }
  0x14   : > { %p162_p8 = scmp.ne.s32.totalorder %s741_s20, %s737_s19  ;;  %s37_s13 = ssub.s32 %s769_s27, %s1052_s7 }
  0x15   : > { %p163_p9 = scmp.eq.s32.totalorder %s494_s29, 3  ;;  %s39_s14 = sor.u32 %s38_s9, %s37_s13 }
  0x16   : > { %p150_p10 = scmp.eq.s32.totalorder %s37_s13, 0  ;;  %p40_p11 = scmp.eq.s32.totalorder %s39_s14, 0 }
  0x17   : > { %p891_p12 = por %p163_p9, %p162_p8  ;;  %p168_p13 = scmp.ne.s32.totalorder %s737_s19, %s733_s18 }
  0x18   : > { %s896_s16 = scalar_select %p150_p10, %s741_s20, %s152_s11  }
  0x19   : > { %s1025_s15 = scalar_select %p891_p12, 1, 0 }
  0x1a   : > { %1027 = sst [smem:[#allocation14_spill]] %s896_s16  ;;  %p169_p0 = scmp.eq.s32.totalorder %s495_s30, 3 }
  0x1b   : > { %1026 = sst [smem:[#allocation13_spill]] %s1025_s15  ;;  %p523_p1 = scmp.lt.s32.totalorder %s773_s28, 4 }
  0x1c   : > { %s899_s17 = scalar_select %p40_p11, %s753_s23, %s42_s8  }
  0x1d   : > { %p904_p2 = por %p169_p0, %p168_p13  ;;  %s201_s29 = sand.u32 1, %s753_s23  }
  0x1e   : > { %1028 = sst [smem:[#allocation15_spill]] %s899_s17  ;;  %s498_s9 = sshll.u32 %s201_s29, 5 }
  0x1f   : > { %s1029_s21 = scalar_select %p904_p2, 1, 0 }
  0x20   : > { %s499_s13 = sshll.u32 %s769_s27, 3  ;;  %s205_s7 = scalar_lea.vmem [#allocation3], %s498_s9 }
  0x21   : > { %1030 = sst [smem:[#allocation16_spill]] %s1029_s21  ;;  %s209_s14 = sadd.s32 %s765_s26, %s499_s13 }
  0x22   : > { %s214_s6 = sshll.u32 %s205_s7, 4  ;;  %s500_s15 = sshll.u32 %s209_s14, 3  ;;  %s215_s6 = int_to_ptr.vmem [resolvable:$true] %s214_s6 }
  0x23   : > { %s211_s17 = scalar_lea.hbm %s1006_s0, %s500_s15  ;;  %p516_p4 = pnand %p523_p1, %p875_p3 }
  0x24   : > { %s212_s30 = sshll.u32 %s211_s17, 4  ;;  %s202_s16 = scalar_lea.sflag [#allocation4], %s201_s29  ;;  %s213_s30 = int_to_ptr.hbm [resolvable:$true] %s212_s30 }
  0x25   : > { %s775_s20 = smov 256   ;;  %s776_s23 = smov 128  }
  0x26   : > { %s777_s21 = smov 8   ;;  %p501_p5 = scmp.ge.s32.totalorder %s773_s28, 1 }
  0x27   : > { %518 = dma.hbm_to_vmem [thread:$0]  (!%p516_p4), %s213_s30, 512, %s215_s6, %s202_s16, %s775_s20, %s776_s23, %s777_s21  }
  0x28   : > { %p222_p6 = scmp.lt.s32.totalorder %s773_s28, 5 }
  0x2a   : > { %p223_p8 = pnand %p501_p5, %p222_p6 }
  0x2b   : > { %s228_s7 = sand.u32 (!%p223_p8), 1, %s749_s22  }
  0x2c   : > { %226 = sbr.rel (%p223_p8) target bundleno = 508 (0x1fc), region = 40  ;;  %s502_s9 = sshll.u32 (!%p223_p8), %s228_s7, 5 }
  0x2d   : > { %s229_s13 = scalar_lea.sflag (!%p223_p8), [#allocation4], %s228_s7  ;;  %s232_s14 = scalar_lea.vmem (!%p223_p8), [#allocation3], %s502_s9 }
  0x31   : > { %724 = dma.done.wait (%p883_p7), %s229_s13, 512  }
  0x32   : > { %726 = vsyncadd (%p883_p7), %s229_s13, 4294966784  ;;  %s257_s10 = sand.u32 1, %s737_s19   ;;  %p503_p3 = scmp.ne.s32.totalorder %s757_s24, 0 }
  0x33   : > { %s926_s20 = scalar_lea.vmem [#allocation6], %s257_s10 }
  0x34   : > { %262 = sbr.rel (%p503_p3) target bundleno = 62 (0x3e), region = 48 }
  0x39   : > { %v778_v0 = vmov 0.0  }
  0x3a   : > { %263 = vst [vmem:[#allocation2 + $0x10] sm:$0xff] %v778_v0 }
  0x3b   : > { %264 = vst [vmem:[#allocation2] sm:$0xff] %v778_v0 }
  0x3c   : > { %265 = vst [vmem:[#allocation2 + $0x18] sm:$0xff] %v778_v0 }
  0x3d   : > { %266 = vst [vmem:[#allocation2 + $0x8] sm:$0xff] %v778_v0 }
  0x3e PF: > { %v267_v1 = vld [vmem:[%s232_s14] sm:$0xff]  ;;  %v268_v3 = vld [vmem:[%s232_s14 + $0x8] sm:$0xff]  ;;  %v269_v6 = vld [vmem:[%s232_s14 + $0x10] sm:$0xff]  ;;  %p504_p7 = scmp.ne.s32.totalorder %s757_s24, 1 }
  0x3f   : > { %v270_v10 = vld [vmem:[%s232_s14 + $0x18] sm:$0xff] }
  0x41   : > { %v271_v2 = vld [vmem:[#allocation2 + $0x10] sm:$0xff] }
  0x42   : > { %v275_v4 = vadd.f32 %v271_v2, %v267_v1  ;;  %v272_v5 = vld [vmem:[#allocation2] sm:$0xff] }
  0x43   : > { %v273_v7 = vld [vmem:[#allocation2 + $0x18] sm:$0xff]  ;;  %v276_v8 = vadd.f32 %v272_v5, %v268_v3  ;;  %286 = sbr.rel (%p504_p7) target bundleno = 494 (0x1ee), region = 52 }
  0x44   : > { %v277_v9 = vadd.f32 %v273_v7, %v269_v6  ;;  %v274_v11 = vld [vmem:[#allocation2 + $0x8] sm:$0xff]  ;;  %279 = vst [vmem:[#allocation2 + $0x10] sm:$0xff] %v275_v4 }
  0x45   : > { %v278_v12 = vadd.f32 %v274_v11, %v270_v10  ;;  %280 = vst [vmem:[#allocation2] sm:$0xff] %v276_v8 }
  0x46   : > { %281 = vst [vmem:[#allocation2 + $0x18] sm:$0xff] %v277_v9 }
  0x47   : > { %282 = vst [vmem:[#allocation2 + $0x8] sm:$0xff] %v278_v12 }
  0x48   : > { %v306_v17 = vld [vmem:[%s1007_s1 + $0x18] sm:$0xff]  ;;  %v305_v18 = vld [vmem:[%s1007_s1 + $0x10] sm:$0xff]  ;;  %v304_v19 = vld [vmem:[%s1007_s1 + $0x8] sm:$0xff]  ;;  %v312_v21 = vlaneseq  ;;  %vm317_vm0 = vcmask 130112   ;;  %vm321_vm1 = vcmask 195712   ;;  %vm325_vm2 = vcmask 261312  }
  0x49   : > { %342 = vmatpush.msra.mxu0 %v306_v17  ;;  %v303_v20 = vld [vmem:[%s1007_s1] sm:$0xff]  ;;  %vm327_vm3 = vcmask 261120   ;;  %vm357_vm4 = vcmask 1041408   ;;  %vm353_vm5 = vcmask 15360   ;;  %vm400_vm9 = vcmask 253952  }
  0x4a   : > { %v313_v24 = vand.u32 127, %v312_v21  ;;  %v351_v41 = vld [vmem:[%s1009_s3] sm:$0x3] }
  0x4b   : > { %v287_v13 = vld [vmem:[#allocation2 + $0x10] sm:$0xff]  ;;  %343 = vmatpush.msra.mxu0 %v305_v18  ;;  %506 = vmatpush.msk.msra.mxu1 %vm357_vm4, %v351_v41  ;;  %v307_v42 = vld [vmem:[%s1008_s2] sm:$0x1] }
  0x4c   : > { %291 = vadd.xlane.f32.xlu0 %v287_v13  ;;  %v288_v15 = vld [vmem:[#allocation2] sm:$0xff]  ;;  %v315_v26 = vadd.s32 4294967288, %v313_v24  ;;  %v323_v27 = vadd.s32 4294967272, %v313_v24  ;;  %v319_v28 = vadd.s32 4294967280, %v313_v24 }
  0x4d   : > { %v289_v14 = vld [vmem:[#allocation2 + $0x18] sm:$0xff]  ;;  %344 = vmatpush.msra.mxu0 %v304_v19  ;;  %v352_v46 = vld [vmem:[%s1010_s4] sm:$0x1] }
  0x4e   : > { %295 = vadd.xlane.f32.xlu1 %v289_v14  ;;  %v290_v16 = vld [vmem:[#allocation2 + $0x8] sm:$0xff] }
  0x4f   : > { %345 = vmatpush.msra.mxu0 %v303_v20 }
  0x54   : > { %293 = vadd.xlane.f32.xlu0 %v288_v15 }
  0x56   : > { %297 = vadd.xlane.f32.xlu1 %v290_v16 }
  0xbf   : > { %v292_v22 = vpop.xlane.xlu0 %291 }
  0xc0   : > { %v299_v25 = vmul.f32 0.00390625, %v292_v22 }
  0xc1   : > { %v296_v23 = vpop.xlane.xlu1 %295 }
  0xc2   : > { %v301_v29 = vmul.f32 0.00390625, %v296_v23  ;;  %v314_v34 = vperm.slane %v299_v25, %v313_v24 }
  0xc4   : > { %v320_v37 = vperm.slane %v301_v29, %v319_v28 }
  0xc7   : > { %v294_v30 = vpop.xlane.xlu0 %293 }
  0xc8   : > { %v300_v32 = vmul.f32 0.00390625, %v294_v30 }
  0xc9   : > { %v298_v31 = vpop.xlane.xlu1 %297 }
  0xca   : > { %v302_v33 = vmul.f32 0.00390625, %v298_v31  ;;  %v316_v35 = vperm.slane %v300_v32, %v315_v26 }
  0xcc   : > { %v324_v36 = vperm.slane %v302_v33, %v323_v27  ;;  %v318_v38 = vsel %vm317_vm0, %v316_v35, %v314_v34 }
  0xcd   : > { %v322_v39 = vsel %vm321_vm1, %v320_v37, %v318_v38 }
  0xce   : > { %v326_v40 = vsel %vm325_vm2, %v324_v36, %v322_v39 }
  0xcf   : > { %505 = vmatmul.msk.f32.vlgmr.msra.gmra.mxu0 %vm327_vm3, %v326_v40 }
 0x14c   : > { %v347_v43 = vpop.f32.mrf.mxu0 }
 0x14d   : > { %v348_v44 = vadd.f32 %v347_v43, %v307_v42 }
 0x14f   : > { %v350_v45 = vmax.f32 %v348_v44, 0.0 }
 0x151   : > { %507 = vmatmul.msk.f32.vlgmr.msra.gmra.mxu1 %vm353_vm5, %v350_v45 }
 0x1ce   : > { %v378_v47 = vpop.f32.mrf.mxu1 }
 0x1cf   : > { %v379_v48 = vadd.f32 %v378_v47, %v352_v46 }
 0x1d1   : > { %v508_v49 = vmul.f32 -1.442695, %v379_v48 }
 0x1d3   : > { %617 = vpow2.f32 %v508_v49 }
 0x1d9   : > { %v618_v50 = vpop.eup %617 }
 0x1da   : > { %v384_v51 = vadd.f32 1.0, %v618_v50 }
 0x1dc   : > { %619 = vrcp.f32 %v384_v51  ;;  %v396_v55 = vand.u32 2147483648, %v384_v51  ;;  %v394_v57 = vand.u32 2147483647, %v384_v51  ;;  %vm390_vm7 = vweird.f32 %v384_v51 }
 0x1de   : > { %v397_v59 = vor.u32 1.1754944e-38, %v396_v55  ;;  %vm395_vm10 = vcmp.eq.f32.partialorder %v394_v57, 8.507059e+37 }
 0x1e2   : > { %v620_v52 = vpop.eup %619 }
 0x1e3   : > { %v386_v53 = vmul.f32 %v620_v52, %v384_v51  ;;  %vm391_vm6 = vweird.f32 %v620_v52 }
 0x1e4   : > { %vm392_vm8 = vmor %vm390_vm7, %vm391_vm6 }
 0x1e5   : > { %v387_v54 = vsub.f32 1.0, %v386_v53 }
 0x1e7   : > { %v388_v56 = vmul.f32 %v620_v52, %v387_v54 }
 0x1e9   : > { %v389_v58 = vadd.f32 %v620_v52, %v388_v56 }
 0x1eb   : > { %v393_v60 = vsel %vm392_vm8, %v620_v52, %v389_v58 }
 0x1ec   : > { %v398_v61 = vsel %vm395_vm10, %v397_v59, %v393_v60 }
 0x1ed   : > { %401 = vst.msk [vmem:[%s926_s20] sm:$0x1] %vm400_vm9, %v398_v61 }
 0x1ee PF: > { %s411_s6 = scalar_lea.hbm %s1011_s5, %s761_s25  ;;  %s413_s12 = sshll.u32 %s926_s20, 4  ;;  %s414_s12 = int_to_ptr.vmem [resolvable:$true] %s413_s12 }
 0x1ef   : > { %s415_s15 = sshll.u32 %s411_s6, 4  ;;  %s403_s24 = scalar_lea.sflag [#allocation5], %s257_s10  ;;  %s416_s15 = int_to_ptr.hbm [resolvable:$true] %s415_s15 }
 0x1f0   : > { %s665_s16 = sshra.s32 %s416_s15, 4  ;;  %s671_s11 = scalar_lea.hbm %s1011_s5, 2  ;;  %s666_s16 = int_to_ptr.hbm [resolvable:$true] %s665_s16 }
 0x1f1   : > { %s667_s17 = scalar_lea.hbm %s666_s16, 1  ;;  %p672_p13 = scmp.lt.s32.totalorder %s666_s16, %s1011_s5 }
 0x1f2   : > { %p668_p9 = scmp.ne.s32.totalorder %s666_s16, %s667_s17  ;;  %p673_p0 = scmp.lt.s32.totalorder %s671_s11, %s667_s17 }
 0x1f4   : > { %p669_p10 = pnand %p668_p9, %p891_p12  ;;  %p674_p1 = por %p673_p0, %p672_p13 }
 0x1f6   : > { %p670_p11 = pneg %p669_p10 }
 0x1f8   : > { %p675_p4 = pnand %p674_p1, %p670_p11 }
 0x1fa   : > { %678 = shalt.err (!%p675_p4)
}
 0x1fb   : > { %513 = dma.vmem_to_hbm [thread:$0]  (%p891_p12), %s414_s12, 16, %s416_s15, %s403_s24  }
 0x1fc PF: > { %p524_p5 = scmp.ge.s32.totalorder %s773_s28, 2  ;;  %s427_s10 = sand.u32 1, %s733_s18  }
 0x1fd   : > { %s428_s20 = scalar_lea.sflag [#allocation5], %s427_s10 }
 0x1fe   : > { %p520_p6 = pnand %p524_p5, %p904_p2 }
 0x200   : > { %p521_p8 = pneg %p520_p6 }
 0x202   : > { %728 = dma.done.wait (%p521_p8), %s428_s20, 16  }
 0x203   : > { %730 = vsyncadd (%p521_p8), %s428_s20, 4294967280  ;;  %s21_s28 = sadd.s32 1, %s773_s28   ;;  %s1033_s7 = sld [smem:[#allocation9_spill]] }
 0x204   : > { %p18_p3 = scmp.ge.s32.totalorder %s21_s28, 6   ;;  %s1034_s20 = sld [smem:[#allocation14_spill]] }
 0x205   : > { %s1035_s9 = sld [smem:[#allocation10_spill]]  ;;  %s1039_s18 = smov %s737_s19 }
 0x206   : > { %s1036_s23 = sld [smem:[#allocation15_spill]]  ;;  %s1041_s21 = smov %s749_s22 }
 0x207   : > { %s1037_s13 = sld [smem:[#allocation11_spill]]  ;;  %s1043_s24 = smov %s765_s26 }
 0x208   : > { %s1038_s14 = sld [smem:[#allocation12_spill]]  ;;  %s1044_s25 = smov %s769_s27 }
 0x209   : > { %s1040_s19 = smov %s1033_s7 }
 0x20a   :  { %20 = sbr.rel (!%p18_p3) target bundleno = 9 (0x9), region = 93 }
 0x20b   : > { %s1042_s22 = smov %s1035_s9 }
 0x20d   : > { %s1045_s26 = smov %s1037_s13 }
 0x20e   : > { %s1046_s27 = smov %s1038_s14 }
 0x20f   :  { %433 = vsyncpa [#allocation4], 1 }
 0x210   :  { %435 = vsyncpa [#allocation4 + $0x1], 1 }
 0x211   :  { %436 = vsyncpa [#allocation5], 1 }
 0x212   :  { %438 = vsyncpa [#allocation5 + $0x1], 1 }

</bundles_post_ra>
